<compile_context>
chip_gen: v7x
topology: tpu7x:2x2x1
jax: 0.10.0
libtpu: 0.0.40
codegen_flags: <defaults>
</compile_context>

<pallas_src>
import jax
import jax.numpy as jnp
from jax.experimental import pallas as pl
from jax.experimental.pallas import tpu as pltpu


def relationf_kernel(x_ref, nb_ref, mnb_ref,
                     wx_ref, wnb_ref, wp_ref, b1_ref, w2_ref, b2_ref,
                     mi_ref, so_ref):
    x = x_ref[...]
    nb = nb_ref[...]

    # fc1 with the [x, nb, nb*x, (nb+x)/2] feature construction folded into
    # the (block-diagonal) weights.  All dots are dense 128-wide MXU tiles.
    h = jnp.dot(x, wx_ref[...], preferred_element_type=jnp.float32)
    h = h + jnp.dot(nb, wnb_ref[...], preferred_element_type=jnp.float32)
    h = h + jnp.dot(nb * x, wp_ref[...], preferred_element_type=jnp.float32)
    h = jnp.maximum(h + b1_ref[...], 0.0)

    # fc2
    mi = jnp.dot(h, w2_ref[...], preferred_element_type=jnp.float32) + b2_ref[...]

    mi_ref[...] = mi.astype(mi_ref.dtype)
    so_ref[...] = (mi - mnb_ref[...]).astype(so_ref.dtype)


def _round_up(v, m):
    return ((v + m - 1) // m) * m


def _num_tensorcores():
    """Best-effort query of TensorCores per chip (2 on v7x, else 1)."""
    try:
        info = pltpu.get_tpu_info()
    except Exception:
        return 1
    for attr in ("num_cores", "num_tensorcores", "tensorcores_per_chip",
                 "core_count"):
        v = getattr(info, attr, None)
        if isinstance(v, int) and v > 0:
            return v
    return 1


def prepare_relationf_params(w1, b1, w2, b2, *, pack=None):
    """One-time (model-init) weight preparation.

    w1: (4*nfeat, nfeat) pre-transposed fc1 weight, b1: (nfeat,)
    w2: (nfeat, nfeat)   pre-transposed fc2 weight, b2: (nfeat,)
    """
    nfeat = w2.shape[0]
    if pack is None:
        pack = 128 // nfeat if (nfeat < 128 and 128 % nfeat == 0) else 1

    # Fold the 4-way feature concat into the fc1 weight.
    w_x = w1[0:nfeat] + 0.5 * w1[3 * nfeat:4 * nfeat]
    w_nb = w1[nfeat:2 * nfeat] + 0.5 * w1[3 * nfeat:4 * nfeat]
    w_p = w1[2 * nfeat:3 * nfeat]

    eye = jnp.eye(pack, dtype=w1.dtype)
    blockdiag = lambda w: jnp.kron(eye, w)          # block_diag(w, ..., w)
    return dict(
        pack=pack, nfeat=nfeat,
        wx=blockdiag(w_x), wnb=blockdiag(w_nb), wp=blockdiag(w_p),
        w2=blockdiag(w2),
        b1=jnp.tile(b1, pack).reshape(1, pack * nfeat),
        b2=jnp.tile(b2, pack).reshape(1, pack * nfeat),
    )


def relation_f(x, neighbor, masked_neighbor, params, *,
               block_rows=2048, num_cores=None):
    """x, neighbor, masked_neighbor: (N, nfeat). params: prepare_relationf_params()."""
    N, nfeat = x.shape
    pack = params["pack"]
    assert params["nfeat"] == nfeat
    pk = pack * nfeat
    if num_cores is None:
        num_cores = _num_tensorcores()

    # Pack `pack` logical rows per lane-row (free row-major reshape).
    rem = N % pack
    if rem:  # tiny pad only so the reshape is legal (costs one copy per array)
        pad = pack - rem
        x = jnp.pad(x, ((0, pad), (0, 0)))
        neighbor = jnp.pad(neighbor, ((0, pad), (0, 0)))
        masked_neighbor = jnp.pad(masked_neighbor, ((0, pad), (0, 0)))
    np_rows = x.shape[0] // pack
    x_p = x.reshape(np_rows, pk)
    nb_p = neighbor.reshape(np_rows, pk)
    mnb_p = masked_neighbor.reshape(np_rows, pk)

    # Tile sizing: biggest block covering the data on single-TC chips; split
    # across cores only when the chip has >=2 TensorCores (v7x).  The ragged
    # last block is handled by Pallas's masked partial-block writes.
    br_target = max(_round_up(max(block_rows // pack, 8), 8), 8)
    if np_rows <= br_target:
        if num_cores >= 2 and np_rows >= 16:
            br = _round_up(pl.cdiv(np_rows, num_cores), 8)
        else:
            br = np_rows  # equals the full array dim -> no (8,128) issue
    else:
        br = br_target
    grid = (pl.cdiv(np_rows, br),)

    row_spec = pl.BlockSpec((br, pk), lambda i: (i, 0))
    w_spec = pl.BlockSpec((pk, pk), lambda i: (0, 0))
    b_spec = pl.BlockSpec((1, pk), lambda i: (0, 0))

    out_shapes = (
        jax.ShapeDtypeStruct((np_rows, pk), x.dtype),  # missing_info (packed)
        jax.ShapeDtypeStruct((np_rows, pk), x.dtype),  # support_out (packed)
    )

    mi_p, so_p = pl.pallas_call(
        relationf_kernel,
        out_shape=out_shapes,
        grid=grid,
        in_specs=[row_spec, row_spec, row_spec,
                  w_spec, w_spec, w_spec, b_spec, w_spec, b_spec],
        out_specs=[row_spec, row_spec],
        compiler_params=pltpu.CompilerParams(
            dimension_semantics=("parallel",)),
    )(x_p, nb_p, mnb_p,
      params["wx"], params["wnb"], params["wp"], params["b1"],
      params["w2"], params["b2"])

    mi = mi_p.reshape(np_rows * pack, nfeat)
    so = so_p.reshape(np_rows * pack, nfeat)
    if rem:
        mi = mi[:N]
        so = so[:N]
    return mi, so


def relation_f_ref(x, neighbor, masked_neighbor, w1, b1, w2, b2):
    feat = jnp.concatenate(
        [x, neighbor, neighbor * x, (neighbor + x) * 0.5], axis=-1)
    h = jnp.maximum(feat @ w1 + b1, 0.0)
    mi = h @ w2 + b2
    return mi, mi - masked_neighbor


if __name__ == "__main__":
    nfeat = 32
    N = 200  # number of nodes (rows)

    key = jax.random.PRNGKey(0)
    kx, kn, km, kw1, kb1, kw2, kb2 = jax.random.split(key, 7)

    x = jax.random.normal(kx, (N, nfeat), dtype=jnp.float32)
    neighbor = jax.random.normal(kn, (N, nfeat), dtype=jnp.float32)
    masked_neighbor = jax.random.normal(km, (N, nfeat), dtype=jnp.float32)

    # PyTorch Linear-style uniform init, stored pre-transposed (in, out).
    bound1 = 1.0 / (4 * nfeat) ** 0.5
    w1 = jax.random.uniform(kw1, (4 * nfeat, nfeat), jnp.float32, -bound1, bound1)
    b1 = jax.random.uniform(kb1, (nfeat,), jnp.float32, -bound1, bound1)
    bound2 = 1.0 / nfeat ** 0.5
    w2 = jax.random.uniform(kw2, (nfeat, nfeat), jnp.float32, -bound2, bound2)
    b2 = jax.random.uniform(kb2, (nfeat,), jnp.float32, -bound2, bound2)

    # One-time weight preparation (model init), off the hot path.
    params = prepare_relationf_params(w1, b1, w2, b2)

    mi, so = relation_f(x, neighbor, masked_neighbor, params)
    jax.block_until_ready((mi, so))

    mi_ref, so_ref = relation_f_ref(x, neighbor, masked_neighbor, w1, b1, w2, b2)
    # Weight-fold / block-diag only reorder f32 adds -> last-ulp differences.
    assert jnp.allclose(mi, mi_ref, atol=1e-4, rtol=1e-4)
    assert jnp.allclose(so, so_ref, atol=1e-4, rtol=1e-4)

    print("KERNEL_OK")
</pallas_src>

<mosaic_0001>
module attributes {stable_mosaic.version = 11 : i64} {
  func.func @relationf_kernel(%arg0: i32, %arg1: memref<50x128xf32, #tpu.memory_space<vmem>>, %arg2: memref<50x128xf32, #tpu.memory_space<vmem>>, %arg3: memref<50x128xf32, #tpu.memory_space<vmem>>, %arg4: memref<128x128xf32, #tpu.memory_space<vmem>>, %arg5: memref<128x128xf32, #tpu.memory_space<vmem>>, %arg6: memref<128x128xf32, #tpu.memory_space<vmem>>, %arg7: memref<1x128xf32, #tpu.memory_space<vmem>>, %arg8: memref<128x128xf32, #tpu.memory_space<vmem>>, %arg9: memref<1x128xf32, #tpu.memory_space<vmem>>, %arg10: memref<50x128xf32, #tpu.memory_space<vmem>>, %arg11: memref<50x128xf32, #tpu.memory_space<vmem>>) attributes {dimension_semantics = [#tpu.dimension_semantics<parallel>], iteration_bounds = array<i64: 1>, scalar_prefetch = 0 : i64, scratch_operands = 0 : i64, tpu.core_type = #tpu.core_type<tc>, window_params = [{transform_indices = @transform_0, window_bounds = array<i64: 50, 128>}, {transform_indices = @transform_1, window_bounds = array<i64: 50, 128>}, {transform_indices = @transform_2, window_bounds = array<i64: 50, 128>}, {pipeline_mode = #tpu.pipeline_mode<synchronous>, transform_indices = @transform_3, window_bounds = array<i64: 128, 128>}, {pipeline_mode = #tpu.pipeline_mode<synchronous>, transform_indices = @transform_4, window_bounds = array<i64: 128, 128>}, {pipeline_mode = #tpu.pipeline_mode<synchronous>, transform_indices = @transform_5, window_bounds = array<i64: 128, 128>}, {pipeline_mode = #tpu.pipeline_mode<synchronous>, transform_indices = @transform_6, window_bounds = array<i64: 1, 128>}, {pipeline_mode = #tpu.pipeline_mode<synchronous>, transform_indices = @transform_7, window_bounds = array<i64: 128, 128>}, {pipeline_mode = #tpu.pipeline_mode<synchronous>, transform_indices = @transform_8, window_bounds = array<i64: 1, 128>}, {transform_indices = @transform_9, window_bounds = array<i64: 50, 128>}, {transform_indices = @transform_10, window_bounds = array<i64: 50, 128>}]} {
    %c0 = arith.constant 0 : index
    %c0_0 = arith.constant 0 : index
    %0 = vector.load %arg1[%c0, %c0_0] : memref<50x128xf32, #tpu.memory_space<vmem>>, vector<50x128xf32>
    %c0_1 = arith.constant 0 : index
    %c0_2 = arith.constant 0 : index
    %1 = vector.load %arg2[%c0_1, %c0_2] : memref<50x128xf32, #tpu.memory_space<vmem>>, vector<50x128xf32>
    %c0_3 = arith.constant 0 : index
    %c0_4 = arith.constant 0 : index
    %2 = vector.load %arg4[%c0_3, %c0_4] : memref<128x128xf32, #tpu.memory_space<vmem>>, vector<128x128xf32>
    %cst = arith.constant dense<0.000000e+00> : vector<50x128xf32>
    %3 = tpu.matmul %0, %2, %cst {dimension_numbers = #tpu.dot_dimension_numbers<[1], [0], [0], [1], [0, 0, 1, 1], [], []>} : vector<50x128xf32>, vector<128x128xf32>, vector<50x128xf32> -> vector<50x128xf32>
    %c0_5 = arith.constant 0 : index
    %c0_6 = arith.constant 0 : index
    %4 = vector.load %arg5[%c0_5, %c0_6] : memref<128x128xf32, #tpu.memory_space<vmem>>, vector<128x128xf32>
    %cst_7 = arith.constant dense<0.000000e+00> : vector<50x128xf32>
    %5 = tpu.matmul %1, %4, %cst_7 {dimension_numbers = #tpu.dot_dimension_numbers<[1], [0], [0], [1], [0, 0, 1, 1], [], []>} : vector<50x128xf32>, vector<128x128xf32>, vector<50x128xf32> -> vector<50x128xf32>
    %6 = arith.addf %3, %5 : vector<50x128xf32>
    %7 = arith.mulf %1, %0 : vector<50x128xf32>
    %c0_8 = arith.constant 0 : index
    %c0_9 = arith.constant 0 : index
    %8 = vector.load %arg6[%c0_8, %c0_9] : memref<128x128xf32, #tpu.memory_space<vmem>>, vector<128x128xf32>
    %cst_10 = arith.constant dense<0.000000e+00> : vector<50x128xf32>
    %9 = tpu.matmul %7, %8, %cst_10 {dimension_numbers = #tpu.dot_dimension_numbers<[1], [0], [0], [1], [0, 0, 1, 1], [], []>} : vector<50x128xf32>, vector<128x128xf32>, vector<50x128xf32> -> vector<50x128xf32>
    %10 = arith.addf %6, %9 : vector<50x128xf32>
    %c0_11 = arith.constant 0 : index
    %c0_12 = arith.constant 0 : index
    %11 = vector.load %arg7[%c0_11, %c0_12] : memref<1x128xf32, #tpu.memory_space<vmem>>, vector<1x128xf32>
    %12 = vector.broadcast %11 : vector<1x128xf32> to vector<50x128xf32>
    %13 = arith.addf %10, %12 : vector<50x128xf32>
    %cst_13 = arith.constant 0.000000e+00 : f32
    %14 = vector.broadcast %cst_13 : f32 to vector<50x128xf32>
    %15 = arith.maximumf %13, %14 : vector<50x128xf32>
    %c0_14 = arith.constant 0 : index
    %c0_15 = arith.constant 0 : index
    %16 = vector.load %arg8[%c0_14, %c0_15] : memref<128x128xf32, #tpu.memory_space<vmem>>, vector<128x128xf32>
    %cst_16 = arith.constant dense<0.000000e+00> : vector<50x128xf32>
    %17 = tpu.matmul %15, %16, %cst_16 {dimension_numbers = #tpu.dot_dimension_numbers<[1], [0], [0], [1], [0, 0, 1, 1], [], []>} : vector<50x128xf32>, vector<128x128xf32>, vector<50x128xf32> -> vector<50x128xf32>
    %c0_17 = arith.constant 0 : index
    %c0_18 = arith.constant 0 : index
    %18 = vector.load %arg9[%c0_17, %c0_18] : memref<1x128xf32, #tpu.memory_space<vmem>>, vector<1x128xf32>
    %19 = vector.broadcast %18 : vector<1x128xf32> to vector<50x128xf32>
    %20 = arith.addf %17, %19 : vector<50x128xf32>
    %c0_19 = arith.constant 0 : index
    %c0_20 = arith.constant 0 : index
    %21 = vector.load %arg10[%c0_19, %c0_20] : memref<50x128xf32, #tpu.memory_space<vmem>>, vector<50x128xf32>
    tpu.vector_store %arg10[%c0_19, %c0_20], %20 {strides = array<i32>} : memref<50x128xf32, #tpu.memory_space<vmem>>, vector<50x128xf32>,
    %c0_21 = arith.constant 0 : index
    %c0_22 = arith.constant 0 : index
    %22 = vector.load %arg3[%c0_21, %c0_22] : memref<50x128xf32, #tpu.memory_space<vmem>>, vector<50x128xf32>
    %23 = arith.subf %20, %22 : vector<50x128xf32>
    %c0_23 = arith.constant 0 : index
    %c0_24 = arith.constant 0 : index
    %24 = vector.load %arg11[%c0_23, %c0_24] : memref<50x128xf32, #tpu.memory_space<vmem>>, vector<50x128xf32>
    tpu.vector_store %arg11[%c0_23, %c0_24], %23 {strides = array<i32>} : memref<50x128xf32, #tpu.memory_space<vmem>>, vector<50x128xf32>,
    return
  }
  func.func @transform_0(%arg0: i32) -> (i32, i32) {
    %c0_i32 = arith.constant 0 : i32
    %c0_i32_0 = arith.constant 0 : i32
    return %arg0, %c0_i32 : i32, i32
  }
  func.func @transform_1(%arg0: i32) -> (i32, i32) {
    %c0_i32 = arith.constant 0 : i32
    %c0_i32_0 = arith.constant 0 : i32
    return %arg0, %c0_i32 : i32, i32
  }
  func.func @transform_2(%arg0: i32) -> (i32, i32) {
    %c0_i32 = arith.constant 0 : i32
    %c0_i32_0 = arith.constant 0 : i32
    return %arg0, %c0_i32 : i32, i32
  }
  func.func @transform_3(%arg0: i32) -> (i32, i32) {
    %c0_i32 = arith.constant 0 : i32
    %c0_i32_0 = arith.constant 0 : i32
    %c0_i32_1 = arith.constant 0 : i32
    return %c0_i32, %c0_i32_0 : i32, i32
  }
  func.func @transform_4(%arg0: i32) -> (i32, i32) {
    %c0_i32 = arith.constant 0 : i32
    %c0_i32_0 = arith.constant 0 : i32
    %c0_i32_1 = arith.constant 0 : i32
    return %c0_i32, %c0_i32_0 : i32, i32
  }
  func.func @transform_5(%arg0: i32) -> (i32, i32) {
    %c0_i32 = arith.constant 0 : i32
    %c0_i32_0 = arith.constant 0 : i32
    %c0_i32_1 = arith.constant 0 : i32
    return %c0_i32, %c0_i32_0 : i32, i32
  }
  func.func @transform_6(%arg0: i32) -> (i32, i32) {
    %c0_i32 = arith.constant 0 : i32
    %c0_i32_0 = arith.constant 0 : i32
    %c0_i32_1 = arith.constant 0 : i32
    return %c0_i32, %c0_i32_0 : i32, i32
  }
  func.func @transform_7(%arg0: i32) -> (i32, i32) {
    %c0_i32 = arith.constant 0 : i32
    %c0_i32_0 = arith.constant 0 : i32
    %c0_i32_1 = arith.constant 0 : i32
    return %c0_i32, %c0_i32_0 : i32, i32
  }
  func.func @transform_8(%arg0: i32) -> (i32, i32) {
    %c0_i32 = arith.constant 0 : i32
    %c0_i32_0 = arith.constant 0 : i32
    %c0_i32_1 = arith.constant 0 : i32
    return %c0_i32, %c0_i32_0 : i32, i32
  }
  func.func @transform_9(%arg0: i32) -> (i32, i32) {
    %c0_i32 = arith.constant 0 : i32
    %c0_i32_0 = arith.constant 0 : i32
    return %arg0, %c0_i32 : i32, i32
  }
  func.func @transform_10(%arg0: i32) -> (i32, i32) {
    %c0_i32 = arith.constant 0 : i32
    %c0_i32_0 = arith.constant 0 : i32
    return %arg0, %c0_i32 : i32, i32
  }
}

</mosaic_0001>

<bundles_post_ra>
// kernel: tpu_custom_call.1
= control target key start
LH: loop header
LB: loop body
LE: loop exit
PB: predicated region body
PF: predicated region fallthrough
CT: control target
= control target key end

     0   :  { %16 = vsyncpa [#allocation3], 0  ;;  %s1687_s0 = inlined_call_operand.hbm [shape: f32[50,128], index: 0, kind: input, shape index: {}]   ;;  %s1688_s1 = inlined_call_operand.hbm [shape: f32[50,128], index: 1, kind: input, shape index: {}]   ;;  %s1689_s2 = inlined_call_operand.hbm [shape: f32[50,128], index: 2, kind: input, shape index: {}]   ;;  %s1690_s3 = inlined_call_operand.hbm [shape: f32[128,128], index: 3, kind: input, shape index: {}]   ;;  %s1691_s4 = inlined_call_operand.hbm [shape: f32[128,128], index: 4, kind: input, shape index: {}]   ;;  %s1692_s5 = inlined_call_operand.hbm [shape: f32[128,128], index: 5, kind: input, shape index: {}]   ;;  %s1693_s6 = inlined_call_operand.vmem [shape: f32[1,128], index: 6, kind: input, shape index: {}]   ;;  %s1694_s7 = inlined_call_operand.hbm [shape: f32[128,128], index: 7, kind: input, shape index: {}]   ;;  %s1695_s8 = inlined_call_operand.vmem [shape: f32[1,128], index: 8, kind: input, shape index: {}]   ;;  %s1696_s9 = inlined_call_operand.hbm [shape: f32[50,128], index: 9, kind: output, shape index: {0}]   ;;  %s1697_s10 = inlined_call_operand.hbm [shape: f32[50,128], index: 10, kind: output, shape index: {1}]  }
   0x1   :  { %17 = vsyncpa [#allocation6], 0 }
   0x2   :  { %18 = vsyncpa [#allocation9], 0 }
   0x3   :  { %19 = vsyncpa [#allocation12], 0 }
   0x4   :  { %20 = vsyncpa [#allocation4], 0 }
   0x5   :  { %21 = vsyncpa [#allocation16], 0  ;;  %s1341_s13 = smov [#allocation5]   ;;  %s1342_s15 = smov [#allocation8]  }
   0x6   :  { %s39_s14 = sshll.u32 %s1341_s13, 4  ;;  %s63_s16 = sshll.u32 %s1342_s15, 4  ;;  %s40_s14 = int_to_ptr.vmem [resolvable:$true] %s39_s14  ;;  %s1410_s16 = int_to_ptr.vmem [resolvable:$true] %s63_s16 }
   0x7   :  { %s1131_s19 = scalar_lea.hbm %s1688_s1, 896 }
   0x8   :  { %p1132_p0 = scmp.ne.s32.totalorder %s1688_s1, %s1131_s19  ;;  %p1135_p1 = scmp.lt.u32.totalorder %s1131_s19, %s1688_s1 }
   0xa   :  { %p1137_p2 = pnand %p1135_p1, %p1132_p0 }
   0xc   :  { %1140 = shalt.err (!%p1137_p2)
}
   0xd   :  { %s1141_s24 = scalar_lea.vmem %s40_s14, 896  ;;  %p1146_p4 = scmp.lt.s32.totalorder %s40_s14, %s40_s14 }
   0xe   :  { %p1142_p3 = scmp.ne.s32.totalorder %s40_s14, %s1141_s24  ;;  %p1147_p5 = scmp.lt.s32.totalorder %s1141_s24, %s1141_s24 }
  0x10   :  { %p1148_p6 = por %p1147_p5, %p1146_p4 }
  0x12   :  { %p1149_p7 = pnand %p1148_p6, %p1142_p3 }
  0x14   :  { %1152 = shalt.err (!%p1149_p7)
}
  0x15   :  { %s1343_s25 = smov 128   ;;  %s1344_s26 = smov 8  }
  0x16   :  { %45 = dma.hbm_to_vmem [thread:$0]  %s1688_s1, 896, %s40_s14, [#allocation6], %s1343_s25, %s1343_s25, %s1344_s26  }
  0x17   :  { %s1153_s11 = scalar_lea.hbm %s1690_s3, 2048 }
  0x18   :  { %p1154_p8 = scmp.ne.s32.totalorder %s1690_s3, %s1153_s11  ;;  %p1157_p9 = scmp.lt.u32.totalorder %s1153_s11, %s1690_s3 }
  0x1a   :  { %p1159_p10 = pnand %p1157_p9, %p1154_p8 }
  0x1c   :  { %1162 = shalt.err (!%p1159_p10)
}
  0x1d   :  { %s1163_s18 = scalar_lea.vmem %s1410_s16, 2048  ;;  %p1168_p12 = scmp.lt.s32.totalorder %s1410_s16, %s1410_s16 }
  0x1e   :  { %p1164_p11 = scmp.ne.s32.totalorder %s1410_s16, %s1163_s18  ;;  %p1169_p13 = scmp.lt.s32.totalorder %s1163_s18, %s1163_s18 }
  0x20   :  { %p1170_p0 = por %p1169_p13, %p1168_p12 }
  0x22   :  { %p1171_p1 = pnand %p1170_p0, %p1164_p11 }
  0x24   :  { %1174 = shalt.err (!%p1171_p1)
}
  0x25   :  { %69 = dma.hbm_to_vmem [thread:$0]  %s1690_s3, 2048, %s1410_s16, [#allocation9], %s1343_s25, %s1343_s25, %s1344_s26  }
  0x26   :  { %s1345_s19 = smov [#allocation11]   ;;  %s1346_s21 = smov [#allocation2]  }
  0x27   :  { %s87_s20 = sshll.u32 %s1345_s19, 4  ;;  %s27_s22 = sshll.u32 %s1346_s21, 4  ;;  %s88_s20 = int_to_ptr.vmem [resolvable:$true] %s87_s20  ;;  %s1447_s22 = int_to_ptr.vmem [resolvable:$true] %s27_s22 }
  0x28   :  { %s1175_s27 = scalar_lea.hbm %s1692_s5, 2048 }
  0x29   :  { %p1176_p2 = scmp.ne.s32.totalorder %s1692_s5, %s1175_s27  ;;  %p1179_p3 = scmp.lt.u32.totalorder %s1175_s27, %s1692_s5 }
  0x2b   :  { %p1181_p4 = pnand %p1179_p3, %p1176_p2 }
  0x2d   :  { %1184 = shalt.err (!%p1181_p4)
}
  0x2e   :  { %s1185_s3 = scalar_lea.vmem %s88_s20, 2048  ;;  %p1190_p6 = scmp.lt.s32.totalorder %s88_s20, %s88_s20 }
  0x2f   :  { %p1186_p5 = scmp.ne.s32.totalorder %s88_s20, %s1185_s3  ;;  %p1191_p7 = scmp.lt.s32.totalorder %s1185_s3, %s1185_s3 }
  0x31   :  { %p1192_p8 = por %p1191_p7, %p1190_p6 }
  0x33   :  { %p1193_p9 = pnand %p1192_p8, %p1186_p5 }
  0x35   :  { %1196 = shalt.err (!%p1193_p9)
}
  0x36   :  { %93 = dma.hbm_to_vmem [thread:$0]  %s1692_s5, 2048, %s88_s20, [#allocation12], %s1343_s25, %s1343_s25, %s1344_s26  }
  0x37   :  { %s1197_s17 = scalar_lea.hbm %s1687_s0, 896 }
  0x38   :  { %p1198_p10 = scmp.ne.s32.totalorder %s1687_s0, %s1197_s17  ;;  %p1201_p11 = scmp.lt.u32.totalorder %s1197_s17, %s1687_s0 }
  0x3a   :  { %p1203_p12 = pnand %p1201_p11, %p1198_p10 }
  0x3c   :  { %1206 = shalt.err (!%p1203_p12)
}
  0x3d   :  { %s1207_s21 = scalar_lea.vmem %s1447_s22, 896  ;;  %p1212_p0 = scmp.lt.s32.totalorder %s1447_s22, %s1447_s22 }
  0x3e   :  { %p1208_p13 = scmp.ne.s32.totalorder %s1447_s22, %s1207_s21  ;;  %p1213_p1 = scmp.lt.s32.totalorder %s1207_s21, %s1207_s21 }
  0x40   :  { %p1214_p2 = por %p1213_p1, %p1212_p0 }
  0x42   :  { %p1215_p3 = pnand %p1214_p2, %p1208_p13 }
  0x44   :  { %1218 = shalt.err (!%p1215_p3)
}
  0x45   :  { %33 = dma.hbm_to_vmem [thread:$0]  %s1687_s0, 896, %s1447_s22, [#allocation3], %s1343_s25, %s1343_s25, %s1344_s26  }
  0x46   :  { %s1347_s23 = smov [#allocation7]   ;;  %s1348_s27 = smov [#allocation10]  }
  0x47   :  { %s51_s24 = sshll.u32 %s1347_s23, 4  ;;  %s75_s28 = sshll.u32 %s1348_s27, 4  ;;  %s52_s24 = int_to_ptr.vmem [resolvable:$true] %s51_s24  ;;  %s1484_s28 = int_to_ptr.vmem [resolvable:$true] %s75_s28 }
  0x48   :  { %s1219_s11 = scalar_lea.hbm %s1689_s2, 896 }
  0x49   :  { %p1220_p4 = scmp.ne.s32.totalorder %s1689_s2, %s1219_s11  ;;  %p1223_p5 = scmp.lt.u32.totalorder %s1219_s11, %s1689_s2 }
  0x4b   :  { %p1225_p6 = pnand %p1223_p5, %p1220_p4 }
  0x4d   :  { %1228 = shalt.err (!%p1225_p6)
}
  0x4e   :  { %s1229_s0 = scalar_lea.vmem %s52_s24, 896  ;;  %p1234_p8 = scmp.lt.s32.totalorder %s52_s24, %s52_s24 }
  0x4f   :  { %p1230_p7 = scmp.ne.s32.totalorder %s52_s24, %s1229_s0  ;;  %p1235_p9 = scmp.lt.s32.totalorder %s1229_s0, %s1229_s0 }
  0x51   :  { %p1236_p10 = por %p1235_p9, %p1234_p8 }
  0x53   :  { %p1237_p11 = pnand %p1236_p10, %p1230_p7 }
  0x55   :  { %1240 = shalt.err (!%p1237_p11)
}
  0x56   :  { %57 = dma.hbm_to_vmem [thread:$0]  %s1689_s2, 896, %s52_s24, [#allocation6], %s1343_s25, %s1343_s25, %s1344_s26  }
  0x57   :  { %s1241_s1 = scalar_lea.hbm %s1691_s4, 2048 }
  0x58   :  { %p1242_p12 = scmp.ne.s32.totalorder %s1691_s4, %s1241_s1  ;;  %p1245_p13 = scmp.lt.u32.totalorder %s1241_s1, %s1691_s4 }
  0x5a   :  { %p1247_p0 = pnand %p1245_p13, %p1242_p12 }
  0x5c   :  { %1250 = shalt.err (!%p1247_p0)
}
  0x5d   :  { %s1251_s20 = scalar_lea.vmem %s1484_s28, 2048  ;;  %p1256_p2 = scmp.lt.s32.totalorder %s1484_s28, %s1484_s28 }
  0x5e   :  { %p1252_p1 = scmp.ne.s32.totalorder %s1484_s28, %s1251_s20  ;;  %p1257_p3 = scmp.lt.s32.totalorder %s1251_s20, %s1251_s20 }
  0x60   :  { %p1258_p4 = por %p1257_p3, %p1256_p2 }
  0x62   :  { %p1259_p5 = pnand %p1258_p4, %p1252_p1 }
  0x64   :  { %1262 = shalt.err (!%p1259_p5)
}
  0x65   :  { %81 = dma.hbm_to_vmem [thread:$0]  %s1691_s4, 2048, %s1484_s28, [#allocation9], %s1343_s25, %s1343_s25, %s1344_s26  }
  0x66   :  { %s1349_s24 = smov [#allocation13]   ;;  %s1263_s11 = scalar_lea.hbm %s1694_s7, 2048 }
  0x67   :  { %s101_s27 = sshll.u32 %s1349_s24, 4  ;;  %p1264_p6 = scmp.ne.s32.totalorder %s1694_s7, %s1263_s11  ;;  %s102_s27 = int_to_ptr.vmem [resolvable:$true] %s101_s27 }
  0x68   :  { %p1267_p7 = scmp.lt.u32.totalorder %s1263_s11, %s1694_s7 }
  0x6a   :  { %p1269_p8 = pnand %p1267_p7, %p1264_p6 }
  0x6c   :  { %1272 = shalt.err (!%p1269_p8)
}
  0x6d   :  { %s1273_s0 = scalar_lea.vmem %s102_s27, 2048  ;;  %p1278_p10 = scmp.lt.s32.totalorder %s102_s27, %s102_s27 }
  0x6e   :  { %p1274_p9 = scmp.ne.s32.totalorder %s102_s27, %s1273_s0  ;;  %p1279_p11 = scmp.lt.s32.totalorder %s1273_s0, %s1273_s0 }
  0x70   :  { %p1280_p12 = por %p1279_p11, %p1278_p10 }
  0x72   :  { %p1281_p13 = pnand %p1280_p12, %p1274_p9 }
  0x74   :  { %1284 = shalt.err (!%p1281_p13)
}
  0x75   :  { %107 = dma.hbm_to_vmem [thread:$0]  %s1694_s7, 2048, %s102_s27, [#allocation12], %s1343_s25, %s1343_s25, %s1344_s26  }
  0x76   :  { %1329 = dma.done.wait [#allocation3], 896  }
  0x77   :  { %1330 = vsyncadd [#allocation3], 4294966400 }
  0x78   :  { %1331 = dma.done.wait [#allocation6], 1792  }
  0x79   :  { %1332 = vsyncadd [#allocation6], 4294965504 }
  0x7a   :  { %1333 = dma.done.wait [#allocation9], 4096  }
  0x7b   :  { %1334 = vsyncadd [#allocation9], 4294963200 }
  0x7c   :  { %1335 = dma.done.wait [#allocation12], 4096  }
  0x7d   :  { %1336 = vsyncadd [#allocation12], 4294963200  ;;  %v1350_v0 = vmov 0.0|0.0   ;;  %vm1351_vm0 = vmmov 0   ;;  %v1352_v1 = vmov 0.0   ;;  %v161_v2 = vld [vmem:[#allocation10] sm:$0xff] }
  0x7e   :  { %1021 = vmatprep.subr.bf16.mxu0 %v1350_v0  ;;  %1045 = vmatprep.subr.bf16.mxu1 %v1350_v0  ;;  %v162_v3 = vld [vmem:[#allocation10 + $0x8] sm:$0xff]  ;;  %v145_v4 = vld [vmem:[#allocation8] sm:$0xff]  ;;  %v163_v7 = vld [vmem:[#allocation10 + $0x10] sm:$0xff]  ;;  %s1354_s18 = smov [#allocation15]  }
  0x7f   :  { %841 = vmatprep.mubr.msk.f32.mxu0 %vm1351_vm0, %v1352_v1  ;;  %894 = vmatprep.mubr.msk.f32.mxu1 %vm1351_vm0, %v1352_v1  ;;  %v1022_v5 = vpack.c.bf16 %v162_v3, %v161_v2  ;;  %v146_v6 = vld [vmem:[#allocation8 + $0x8] sm:$0xff]  ;;  %v164_v8 = vld [vmem:[#allocation10 + $0x18] sm:$0xff]  ;;  %v147_v10 = vld [vmem:[#allocation8 + $0x10] sm:$0xff]  ;;  %s696_s1 = sshll.u32 %s1354_s18, 4  ;;  %s1650_s1 = int_to_ptr.vmem [resolvable:$true] %s696_s1 }
  0x80   :  { %v1046_v9 = vpack.c.bf16 %v146_v6, %v145_v4  ;;  %v148_v11 = vld [vmem:[#allocation8 + $0x18] sm:$0xff]  ;;  %v1025_v12 = vpack.c.bf16 %v164_v8, %v163_v7  ;;  %v165_v14 = vld [vmem:[#allocation10 + $0x20] sm:$0xff]  ;;  %v166_v15 = vld [vmem:[#allocation10 + $0x28] sm:$0xff] }
  0x81   :  { %1023 = vmatpush3.bf16.msra.mxu0 %v1022_v5  ;;  %v1049_v13 = vpack.c.bf16 %v148_v11, %v147_v10  ;;  %v149_v16 = vld [vmem:[#allocation8 + $0x20] sm:$0xff]  ;;  %v150_v17 = vld [vmem:[#allocation8 + $0x28] sm:$0xff]  ;;  %v1028_v18 = vpack.c.bf16 %v166_v15, %v165_v14  ;;  %v167_v20 = vld [vmem:[#allocation10 + $0x30] sm:$0xff] }
  0x82   :  { %1047 = vmatpush3.bf16.msra.mxu1 %v1046_v9  ;;  %1024 = vmatprep.subr.bf16.mxu0 %v1350_v0  ;;  %v1052_v19 = vpack.c.bf16 %v150_v17, %v149_v16  ;;  %v168_v21 = vld [vmem:[#allocation10 + $0x38] sm:$0xff]  ;;  %v151_v22 = vld [vmem:[#allocation8 + $0x30] sm:$0xff]  ;;  %v169_v26 = vld [vmem:[#allocation10 + $0x40] sm:$0xff] }
  0x83   :  { %1048 = vmatprep.subr.bf16.mxu1 %v1350_v0  ;;  %v152_v23 = vld [vmem:[#allocation8 + $0x38] sm:$0xff]  ;;  %v1031_v24 = vpack.c.bf16 %v168_v21, %v167_v20  ;;  %v170_v27 = vld [vmem:[#allocation10 + $0x48] sm:$0xff]  ;;  %v153_v28 = vld [vmem:[#allocation8 + $0x40] sm:$0xff] }
  0x84   :  { %v1055_v25 = vpack.c.bf16 %v152_v23, %v151_v22  ;;  %v154_v29 = vld [vmem:[#allocation8 + $0x48] sm:$0xff]  ;;  %v1034_v30 = vpack.c.bf16 %v170_v27, %v169_v26  ;;  %v171_v32 = vld [vmem:[#allocation10 + $0x50] sm:$0xff]  ;;  %v172_v33 = vld [vmem:[#allocation10 + $0x58] sm:$0xff] }
  0x85   :  { %1026 = vmatpush3.bf16.msra.mxu0 %v1025_v12  ;;  %v1058_v31 = vpack.c.bf16 %v154_v29, %v153_v28  ;;  %v155_v34 = vld [vmem:[#allocation8 + $0x50] sm:$0xff]  ;;  %v156_v35 = vld [vmem:[#allocation8 + $0x58] sm:$0xff]  ;;  %v1037_v36 = vpack.c.bf16 %v172_v33, %v171_v32  ;;  %v173_v38 = vld [vmem:[#allocation10 + $0x60] sm:$0xff] }
  0x86   :  { %1050 = vmatpush3.bf16.msra.mxu1 %v1049_v13  ;;  %1027 = vmatprep.subr.bf16.mxu0 %v1350_v0  ;;  %v1061_v37 = vpack.c.bf16 %v156_v35, %v155_v34  ;;  %v174_v39 = vld [vmem:[#allocation10 + $0x68] sm:$0xff]  ;;  %v157_v40 = vld [vmem:[#allocation8 + $0x60] sm:$0xff]  ;;  %v175_v44 = vld [vmem:[#allocation10 + $0x70] sm:$0xff] }
  0x87   :  { %1051 = vmatprep.subr.bf16.mxu1 %v1350_v0  ;;  %v158_v41 = vld [vmem:[#allocation8 + $0x68] sm:$0xff]  ;;  %v1040_v42 = vpack.c.bf16 %v174_v39, %v173_v38  ;;  %v176_v45 = vld [vmem:[#allocation10 + $0x78] sm:$0xff]  ;;  %v159_v46 = vld [vmem:[#allocation8 + $0x70] sm:$0xff] }
  0x88   :  { %v1064_v43 = vpack.c.bf16 %v158_v41, %v157_v40  ;;  %v160_v47 = vld [vmem:[#allocation8 + $0x78] sm:$0xff]  ;;  %v1043_v48 = vpack.c.bf16 %v176_v45, %v175_v44  ;;  %v384_v50 = vld [vmem:[#allocation11] sm:$0xff]  ;;  %v385_v51 = vld [vmem:[#allocation11 + $0x8] sm:$0xff] }
  0x89   :  { %1029 = vmatpush3.bf16.msra.mxu0 %v1028_v18  ;;  %v1067_v49 = vpack.c.bf16 %v160_v47, %v159_v46  ;;  %v1556_v52 = vld [vmem:[#allocation5] sm:$0xff]  ;;  %v1070_v53 = vpack.c.bf16 %v385_v51, %v384_v50  ;;  %v1559_v54 = vld [vmem:[#allocation2] sm:$0xff]  ;;  %v1569_v59 = vld [vmem:[#allocation2 + $0x8] sm:$0xff] }
  0x8a   :  { %1053 = vmatpush3.bf16.msra.mxu1 %v1052_v19  ;;  %1030 = vmatprep.subr.bf16.mxu0 %v1350_v0  ;;  %v386_v55 = vld [vmem:[#allocation11 + $0x10] sm:$0xff]  ;;  %v387_v56 = vld [vmem:[#allocation11 + $0x18] sm:$0xff]  ;;  %v388_v60 = vld [vmem:[#allocation11 + $0x20] sm:$0xff]  ;;  %v377_v26 = vmul.f32 %v1556_v52, %v1559_v54 }
  0x8b   :  { %1054 = vmatprep.subr.bf16.mxu1 %v1350_v0  ;;  %v1073_v57 = vpack.c.bf16 %v387_v56, %v386_v55  ;;  %v1564_v58 = vld [vmem:[#allocation5 + $0x8] sm:$0xff]  ;;  %v389_v61 = vld [vmem:[#allocation11 + $0x28] sm:$0xff]  ;;  %v1575_v63 = vld [vmem:[#allocation5 + $0x10] sm:$0xff] }
  0x8c   :  { %v1076_v62 = vpack.c.bf16 %v389_v61, %v388_v60  ;;  %v133_v2 = vld [vmem:[#allocation2 + $0x10] sm:$0xff]  ;;  %v390_v3 = vld [vmem:[#allocation11 + $0x30] sm:$0xff]  ;;  %v391_v4 = vld [vmem:[#allocation11 + $0x38] sm:$0xff]  ;;  %v378_v27 = vmul.f32 %v1564_v58, %v1569_v59 }
  0x8d   :  { %1032 = vmatpush3.bf16.msra.mxu0 %v1031_v24  ;;  %v1079_v5 = vpack.c.bf16 %v391_v4, %v390_v3  ;;  %v141_v6 = vld [vmem:[#allocation5 + $0x18] sm:$0xff]  ;;  %v134_v7 = vld [vmem:[#allocation2 + $0x18] sm:$0xff]  ;;  %v392_v8 = vld [vmem:[#allocation11 + $0x40] sm:$0xff]  ;;  %v379_v28 = vmul.f32 %v1575_v63, %v133_v2 }
  0x8e   :  { %1056 = vmatpush3.bf16.msra.mxu1 %v1055_v25  ;;  %1033 = vmatprep.subr.bf16.mxu0 %v1350_v0  ;;  %v393_v9 = vld [vmem:[#allocation11 + $0x48] sm:$0xff]  ;;  %v142_v11 = vld [vmem:[#allocation5 + $0x20] sm:$0xff]  ;;  %v135_v12 = vld [vmem:[#allocation2 + $0x20] sm:$0xff]  ;;  %v380_v29 = vmul.f32 %v141_v6, %v134_v7 }
  0x8f   :  { %1057 = vmatprep.subr.bf16.mxu1 %v1350_v0  ;;  %v1082_v10 = vpack.c.bf16 %v393_v9, %v392_v8  ;;  %v394_v13 = vld [vmem:[#allocation11 + $0x50] sm:$0xff]  ;;  %v395_v14 = vld [vmem:[#allocation11 + $0x58] sm:$0xff]  ;;  %v136_v17 = vld [vmem:[#allocation2 + $0x28] sm:$0xff] }
  0x90   :  { %v1085_v15 = vpack.c.bf16 %v395_v14, %v394_v13  ;;  %v143_v16 = vld [vmem:[#allocation5 + $0x28] sm:$0xff]  ;;  %v396_v18 = vld [vmem:[#allocation11 + $0x60] sm:$0xff]  ;;  %v397_v19 = vld [vmem:[#allocation11 + $0x68] sm:$0xff] }
  0x91   :  { %1035 = vmatpush3.bf16.msra.mxu0 %v1034_v30  ;;  %v1088_v20 = vpack.c.bf16 %v397_v19, %v396_v18  ;;  %v144_v21 = vld [vmem:[#allocation5 + $0x30] sm:$0x3]  ;;  %v137_v22 = vld [vmem:[#allocation2 + $0x30] sm:$0x3]  ;;  %v398_v23 = vld [vmem:[#allocation11 + $0x70] sm:$0xff]  ;;  %v381_v30 = vmul.f32 %v142_v11, %v135_v12 }
  0x92   :  { %1059 = vmatpush3.bf16.msra.mxu1 %v1058_v31  ;;  %1036 = vmatprep.subr.bf16.mxu0 %v1350_v0  ;;  %v399_v24 = vld [vmem:[#allocation11 + $0x78] sm:$0xff]  ;;  %v382_v31 = vmul.f32 %v143_v16, %v136_v17  ;;  %v383_v32 = vmul.f32 %v144_v21, %v137_v22  ;;  %v528_v33 = vld [vmem:[#allocation13] sm:$0xff]  ;;  %v529_v34 = vld [vmem:[#allocation13 + $0x8] sm:$0xff] }
  0x93   :  { %1060 = vmatprep.subr.bf16.mxu1 %v1350_v0  ;;  %v1091_v25 = vpack.c.bf16 %v399_v24, %v398_v23  ;;  %v1094_v35 = vpack.c.bf16 %v529_v34, %v528_v33  ;;  %v532_v39 = vld [vmem:[#allocation13 + $0x20] sm:$0xff]  ;;  %v533_v40 = vld [vmem:[#allocation13 + $0x28] sm:$0xff]  ;;  %v543_v55 = vld [vmem:[#allocation13 + $0x78] sm:$0xff] }
  0x94   :  { %v1100_v41 = vpack.c.bf16 %v533_v40, %v532_v39  ;;  %v536_v45 = vld [vmem:[#allocation13 + $0x40] sm:$0xff]  ;;  %v537_v46 = vld [vmem:[#allocation13 + $0x48] sm:$0xff] }
  0x95   :  { %1038 = vmatpush3.bf16.msra.mxu0 %v1037_v36  ;;  %v530_v36 = vld [vmem:[#allocation13 + $0x10] sm:$0xff]  ;;  %v1106_v47 = vpack.c.bf16 %v537_v46, %v536_v45  ;;  %v540_v51 = vld [vmem:[#allocation13 + $0x60] sm:$0xff] }
  0x96   :  { %1062 = vmatpush3.bf16.msra.mxu1 %v1061_v37  ;;  %1039 = vmatprep.subr.bf16.mxu0 %v1350_v0  ;;  %v531_v37 = vld [vmem:[#allocation13 + $0x18] sm:$0xff] }
  0x97   :  { %1063 = vmatprep.subr.bf16.mxu1 %v1350_v0  ;;  %v1097_v38 = vpack.c.bf16 %v531_v37, %v530_v36 }
  0x99   :  { %1041 = vmatpush3.bf16.msra.mxu0 %v1040_v42  ;;  %v534_v42 = vld [vmem:[#allocation13 + $0x30] sm:$0xff] }
  0x9a   :  { %1065 = vmatpush3.bf16.msra.mxu1 %v1064_v43  ;;  %1042 = vmatprep.subr.bf16.mxu0 %v1350_v0  ;;  %v535_v43 = vld [vmem:[#allocation13 + $0x38] sm:$0xff] }
  0x9b   :  { %1066 = vmatprep.subr.bf16.mxu1 %v1350_v0  ;;  %v1103_v44 = vpack.c.bf16 %v535_v43, %v534_v42 }
  0x9d   :  { %1044 = vmatpush3.bf16.msra.mxu0 %v1043_v48  ;;  %v538_v48 = vld [vmem:[#allocation13 + $0x50] sm:$0xff] }
  0x9e   :  { %1068 = vmatpush3.bf16.msra.mxu1 %v1067_v49  ;;  %1069 = vmatprep.subr.bf16.mxu0 %v1350_v0  ;;  %v539_v49 = vld [vmem:[#allocation13 + $0x58] sm:$0xff] }
  0x9f   :  { %1093 = vmatprep.subr.bf16.mxu1 %v1350_v0  ;;  %v1109_v50 = vpack.c.bf16 %v539_v49, %v538_v48 }
  0xa0   :  { %842 = vmatmul.mubr.f32.vlgmr.msra.gmra.mrb[0].mxu0 %v1556_v52  ;;  %v541_v52 = vld [vmem:[#allocation13 + $0x68] sm:$0xff] }
  0xa1   :  { %895 = vmatmul.mubr.f32.vlgmr.msra.gmra.mrb[0].mxu1 %v1559_v54  ;;  %1071 = vmatpush3.bf16.msra.mxu0 %v1070_v53  ;;  %v1112_v53 = vpack.c.bf16 %v541_v52, %v540_v51  ;;  %v542_v54 = vld [vmem:[#allocation13 + $0x70] sm:$0xff] }
  0xa2   :  { %1072 = vmatprep.subr.bf16.mxu0 %v1350_v0  ;;  %844 = vmatprep.mubr.msk.f32.mxu0 %vm1351_vm0, %v1352_v1  ;;  %v1115_v56 = vpack.c.bf16 %v543_v55, %v542_v54 }
  0xa3   :  { %897 = vmatprep.mubr.msk.f32.mxu1 %vm1351_vm0, %v1352_v1  ;;  %1095 = vmatpush3.bf16.msra.mxu1 %v1094_v35 }
  0xa4   :  { %845 = vmatmul.mubr.f32.gmra.mrb[2].mxu0 %v1564_v58  ;;  %1096 = vmatprep.subr.bf16.mxu1 %v1350_v0 }
  0xa5   :  { %1074 = vmatpush3.bf16.msra.mxu0 %v1073_v57  ;;  %898 = vmatmul.mubr.f32.gmra.mrb[2].mxu1 %v1569_v59 }
  0xa6   :  { %1075 = vmatprep.subr.bf16.mxu0 %v1350_v0  ;;  %847 = vmatprep.mubr.msk.f32.mxu0 %vm1351_vm0, %v1352_v1 }
  0xa7   :  { %900 = vmatprep.mubr.msk.f32.mxu1 %vm1351_vm0, %v1352_v1  ;;  %1098 = vmatpush3.bf16.msra.mxu1 %v1097_v38 }
  0xa8   :  { %848 = vmatmul.mubr.f32.gmra.mrb[4].mxu0 %v1575_v63  ;;  %1099 = vmatprep.subr.bf16.mxu1 %v1350_v0 }
  0xa9   :  { %1077 = vmatpush3.bf16.msra.mxu0 %v1076_v62  ;;  %901 = vmatmul.mubr.f32.gmra.mrb[4].mxu1 %v133_v2 }
  0xaa   :  { %1078 = vmatprep.subr.bf16.mxu0 %v1350_v0  ;;  %850 = vmatprep.mubr.msk.f32.mxu0 %vm1351_vm0, %v1352_v1 }
  0xab   :  { %903 = vmatprep.mubr.msk.f32.mxu1 %vm1351_vm0, %v1352_v1  ;;  %1101 = vmatpush3.bf16.msra.mxu1 %v1100_v41 }
  0xac   :  { %851 = vmatmul.mubr.f32.gmra.mrb[6].mxu0 %v141_v6  ;;  %1102 = vmatprep.subr.bf16.mxu1 %v1350_v0 }
  0xad   :  { %1080 = vmatpush3.bf16.msra.mxu0 %v1079_v5  ;;  %904 = vmatmul.mubr.f32.gmra.mrb[6].mxu1 %v134_v7 }
  0xae   :  { %1081 = vmatprep.subr.bf16.mxu0 %v1350_v0  ;;  %853 = vmatprep.mubr.msk.f32.mxu0 %vm1351_vm0, %v1352_v1 }
  0xaf   :  { %906 = vmatprep.mubr.msk.f32.mxu1 %vm1351_vm0, %v1352_v1  ;;  %1104 = vmatpush3.bf16.msra.mxu1 %v1103_v44 }
  0xb0   :  { %854 = vmatmul.mubr.f32.gmra.mrb[8].mxu0 %v142_v11  ;;  %1105 = vmatprep.subr.bf16.mxu1 %v1350_v0 }
  0xb1   :  { %1083 = vmatpush3.bf16.msra.mxu0 %v1082_v10  ;;  %907 = vmatmul.mubr.f32.gmra.mrb[8].mxu1 %v135_v12 }
  0xb2   :  { %1084 = vmatprep.subr.bf16.mxu0 %v1350_v0  ;;  %856 = vmatprep.mubr.msk.f32.mxu0 %vm1351_vm0, %v1352_v1 }
  0xb3   :  { %909 = vmatprep.mubr.msk.f32.mxu1 %vm1351_vm0, %v1352_v1  ;;  %1107 = vmatpush3.bf16.msra.mxu1 %v1106_v47 }
  0xb4   :  { %857 = vmatmul.mubr.f32.gmra.mrb[10].mxu0 %v143_v16  ;;  %1108 = vmatprep.subr.bf16.mxu1 %v1350_v0 }
  0xb5   :  { %1086 = vmatpush3.bf16.msra.mxu0 %v1085_v15  ;;  %910 = vmatmul.mubr.f32.gmra.mrb[10].mxu1 %v136_v17 }
  0xb6   :  { %1087 = vmatprep.subr.bf16.mxu0 %v1350_v0  ;;  %859 = vmatprep.mubr.msk.f32.mxu0 %vm1351_vm0, %v1352_v1 }
  0xb7   :  { %912 = vmatprep.mubr.msk.f32.mxu1 %vm1351_vm0, %v1352_v1  ;;  %1110 = vmatpush3.bf16.msra.mxu1 %v1109_v50 }
  0xb8   :  { %860 = vmatmul.mubr.f32.gmra.mrb[12].mxu0 %v144_v21  ;;  %1111 = vmatprep.subr.bf16.mxu1 %v1350_v0 }
  0xb9   :  { %1089 = vmatpush3.bf16.msra.mxu0 %v1088_v20  ;;  %913 = vmatmul.mubr.f32.gmra.mrb[12].mxu1 %v137_v22 }
  0xba   :  { %1090 = vmatprep.subr.bf16.mxu0 %v1350_v0  ;;  %947 = vmatprep.mubr.msk.f32.mxu0 %vm1351_vm0, %v1352_v1 }
  0xbb   :  { %1000 = vmatprep.mubr.msk.f32.mxu1 %vm1351_vm0, %v1352_v1  ;;  %1113 = vmatpush3.bf16.msra.mxu1 %v1112_v53 }
  0xbc   :  { %1114 = vmatprep.subr.bf16.mxu1 %v1350_v0 }
  0xbd   :  { %1092 = vmatpush3.bf16.msra.mxu0 %v1091_v25 }
  0xbf   :  { %1116 = vmatpush3.bf16.msra.mxu1 %v1115_v56 }
  0xc0   :  { %948 = vmatmul.mubr.f32.vlgmr.msra.gmra.mrb[14].mxu0 %v377_v26 }
  0xc1   :  { %950 = vmatprep.mubr.msk.f32.mxu0 %vm1351_vm0, %v1352_v1 }
  0xc4   :  { %951 = vmatmul.mubr.f32.gmra.mrb[16].mxu0 %v378_v27 }
  0xc5   :  { %953 = vmatprep.mubr.msk.f32.mxu0 %vm1351_vm0, %v1352_v1 }
  0xc8   :  { %954 = vmatmul.mubr.f32.gmra.mrb[18].mxu0 %v379_v28 }
  0xc9   :  { %956 = vmatprep.mubr.msk.f32.mxu0 %vm1351_vm0, %v1352_v1 }
  0xcc   :  { %957 = vmatmul.mubr.f32.gmra.mrb[20].mxu0 %v380_v29 }
  0xcd   :  { %959 = vmatprep.mubr.msk.f32.mxu0 %vm1351_vm0, %v1352_v1 }
  0xd0   :  { %960 = vmatmul.mubr.f32.gmra.mrb[22].mxu0 %v381_v30  ;;  %v715_v30 = vld [vmem:[%s1693_s6] ss:$0 sm:$0xff] }
  0xd1   :  { %962 = vmatprep.mubr.msk.f32.mxu0 %vm1351_vm0, %v1352_v1 }
  0xd4   :  { %963 = vmatmul.mubr.f32.gmra.mrb[24].mxu0 %v382_v31 }
  0xd5   :  { %965 = vmatprep.mubr.msk.f32.mxu0 %vm1351_vm0, %v1352_v1 }
  0xd8   :  { %966 = vmatmul.mubr.f32.gmra.mrb[26].mxu0 %v383_v32 }
 0x173   :  { %v243_v57 = vpop.f32.mrb[0].mxu0 }
 0x174   :  { %v843_v58 = vpop.f32.mrb[1].mxu0  ;;  %v343_v59 = vpop.f32.mrb[0].mxu1 }
 0x175   :  { %v344_v60 = vadd.f32 %v343_v59, %v243_v57  ;;  %v896_v61 = vpop.f32.mrb[1].mxu1 }
 0x177   :  { %v248_v62 = vpop.f32.mrb[2].mxu0 }
 0x178   :  { %v846_v63 = vpop.f32.mrb[3].mxu0  ;;  %v348_v2 = vpop.f32.mrb[2].mxu1 }
 0x179   :  { %v349_v3 = vadd.f32 %v348_v2, %v248_v62  ;;  %v899_v4 = vpop.f32.mrb[3].mxu1 }
 0x17b   :  { %v253_v5 = vpop.f32.mrb[4].mxu0 }
 0x17c   :  { %v849_v6 = vpop.f32.mrb[5].mxu0  ;;  %v353_v7 = vpop.f32.mrb[4].mxu1 }
 0x17d   :  { %v354_v8 = vadd.f32 %v353_v7, %v253_v5  ;;  %v902_v9 = vpop.f32.mrb[5].mxu1  ;;  %v658_v5 = vld [vmem:[#allocation7] sm:$0xff] }
 0x17f   :  { %v258_v0 = vpop.f32.mrb[6].mxu0 }
 0x180   :  { %v852_v10 = vpop.f32.mrb[7].mxu0  ;;  %v358_v11 = vpop.f32.mrb[6].mxu1 }
 0x181   :  { %v359_v12 = vadd.f32 %v358_v11, %v258_v0  ;;  %v905_v13 = vpop.f32.mrb[7].mxu1  ;;  %v659_v0 = vld [vmem:[#allocation7 + $0x8] sm:$0xff] }
 0x182   :  { %v660_v13 = vld [vmem:[#allocation7 + $0x10] sm:$0xff] }
 0x183   :  { %v263_v14 = vpop.f32.mrb[8].mxu0 }
 0x184   :  { %v855_v15 = vpop.f32.mrb[9].mxu0  ;;  %v363_v16 = vpop.f32.mrb[8].mxu1 }
 0x185   :  { %v364_v17 = vadd.f32 %v363_v16, %v263_v14  ;;  %v908_v18 = vpop.f32.mrb[9].mxu1 }
 0x186   :  { %v661_v18 = vld [vmem:[#allocation7 + $0x18] sm:$0xff] }
 0x187   :  { %v268_v19 = vpop.f32.mrb[10].mxu0 }
 0x188   :  { %v858_v20 = vpop.f32.mrb[11].mxu0  ;;  %v368_v21 = vpop.f32.mrb[10].mxu1 }
 0x189   :  { %v369_v22 = vadd.f32 %v368_v21, %v268_v19  ;;  %v911_v23 = vpop.f32.mrb[11].mxu1 }
 0x18a   :  { %v662_v23 = vld [vmem:[#allocation7 + $0x20] sm:$0xff] }
 0x18b   :  { %v273_v24 = vpop.f32.mrb[12].mxu0 }
 0x18c   :  { %v861_v25 = vpop.f32.mrb[13].mxu0  ;;  %v373_v26 = vpop.f32.mrb[12].mxu1 }
 0x18d   :  { %v374_v27 = vadd.f32 %v373_v26, %v273_v24  ;;  %v914_v28 = vpop.f32.mrb[13].mxu1 }
 0x18e   :  { %v663_v28 = vld [vmem:[#allocation7 + $0x28] sm:$0xff] }
 0x193   :  { %v466_v29 = vpop.f32.mrb[14].mxu0 }
 0x194   :  { %v500_v31 = vadd.f32 %v466_v29, %v344_v60  ;;  %v949_v32 = vpop.f32.mrb[15].mxu0 }
 0x196   :  { %v514_v33 = vadd.f32 %v715_v30, %v500_v31 }
 0x197   :  { %v471_v34 = vpop.f32.mrb[16].mxu0 }
 0x198   :  { %v521_v35 = vmax.f32 %v514_v33, 0.0  ;;  %v501_v36 = vadd.f32 %v471_v34, %v349_v3  ;;  %v952_v37 = vpop.f32.mrb[17].mxu0  ;;  %v716_v3 = vld [vmem:[%s1695_s8] ss:$0 sm:$0xff]  ;;  %s1353_s8 = smov [#allocation14]  }
 0x199   :  { %s684_s17 = sshll.u32 %s1353_s8, 4  ;;  %v664_v33 = vld [vmem:[#allocation7 + $0x30] sm:$0x3]  ;;  %s685_s17 = int_to_ptr.vmem [resolvable:$true] %s684_s17 }
 0x19a   :  { %v515_v38 = vadd.f32 %v715_v30, %v501_v36  ;;  %1001 = vmatmul.mubr.f32.vlgmr.msra.gmra.mrb[14].mxu1 %v521_v35  ;;  %s1285_s14 = scalar_lea.vmem %s685_s17, 896  ;;  %p1290_p1 = scmp.lt.s32.totalorder %s685_s17, %s685_s17 }
 0x19b   :  { %v476_v39 = vpop.f32.mrb[18].mxu0  ;;  %1003 = vmatprep.mubr.msk.f32.mxu1 %vm1351_vm0, %v1352_v1  ;;  %p1286_p0 = scmp.ne.s32.totalorder %s685_s17, %s1285_s14  ;;  %p1291_p2 = scmp.lt.s32.totalorder %s1285_s14, %s1285_s14 }
 0x19c   :  { %v522_v40 = vmax.f32 %v515_v38, 0.0  ;;  %v502_v41 = vadd.f32 %v476_v39, %v354_v8  ;;  %v955_v42 = vpop.f32.mrb[19].mxu0 }
 0x19d   :  { %p1292_p3 = por %p1291_p2, %p1290_p1 }
 0x19e   :  { %v516_v43 = vadd.f32 %v715_v30, %v502_v41  ;;  %1004 = vmatmul.mubr.f32.gmra.mrb[16].mxu1 %v522_v40 }
 0x19f   :  { %v481_v44 = vpop.f32.mrb[20].mxu0  ;;  %1006 = vmatprep.mubr.msk.f32.mxu1 %vm1351_vm0, %v1352_v1  ;;  %p1293_p4 = pnand %p1292_p3, %p1286_p0 }
 0x1a0   :  { %v523_v45 = vmax.f32 %v516_v43, 0.0  ;;  %v503_v46 = vadd.f32 %v481_v44, %v359_v12  ;;  %v958_v47 = vpop.f32.mrb[21].mxu0 }
 0x1a2   :  { %v517_v48 = vadd.f32 %v715_v30, %v503_v46  ;;  %1007 = vmatmul.mubr.f32.gmra.mrb[18].mxu1 %v523_v45 }
 0x1a3   :  { %v486_v49 = vpop.f32.mrb[22].mxu0  ;;  %1009 = vmatprep.mubr.msk.f32.mxu1 %vm1351_vm0, %v1352_v1 }
 0x1a4   :  { %v524_v50 = vmax.f32 %v517_v48, 0.0  ;;  %v504_v51 = vadd.f32 %v486_v49, %v364_v17  ;;  %v961_v52 = vpop.f32.mrb[23].mxu0 }
 0x1a6   :  { %v518_v53 = vadd.f32 %v715_v30, %v504_v51  ;;  %1010 = vmatmul.mubr.f32.gmra.mrb[20].mxu1 %v524_v50 }
 0x1a7   :  { %v491_v54 = vpop.f32.mrb[24].mxu0  ;;  %1012 = vmatprep.mubr.msk.f32.mxu1 %vm1351_vm0, %v1352_v1 }
 0x1a8   :  { %v525_v55 = vmax.f32 %v518_v53, 0.0  ;;  %v505_v56 = vadd.f32 %v491_v54, %v369_v22  ;;  %v964_v57 = vpop.f32.mrb[25].mxu0 }
 0x1aa   :  { %v519_v58 = vadd.f32 %v715_v30, %v505_v56  ;;  %1013 = vmatmul.mubr.f32.gmra.mrb[22].mxu1 %v525_v55 }
 0x1ab   :  { %v496_v59 = vpop.f32.mrb[26].mxu0  ;;  %1015 = vmatprep.mubr.msk.f32.mxu1 %vm1351_vm0, %v1352_v1 }
 0x1ac   :  { %v526_v60 = vmax.f32 %v519_v58, 0.0  ;;  %v506_v61 = vadd.f32 %v496_v59, %v374_v27  ;;  %v967_v62 = vpop.f32.mrb[27].mxu0 }
 0x1ae   :  { %v520_v63 = vadd.f32 %v715_v30, %v506_v61  ;;  %1016 = vmatmul.mubr.f32.gmra.mrb[24].mxu1 %v526_v60 }
 0x1af   :  { %1018 = vmatprep.mubr.msk.f32.mxu1 %vm1351_vm0, %v1352_v1 }
 0x1b0   :  { %v527_v2 = vmax.f32 %v520_v63, 0.0 }
 0x1b2   :  { %1019 = vmatmul.mubr.f32.gmra.mrb[26].mxu1 %v527_v2 }
 0x26d   :  { %v617_v4 = vpop.f32.mrb[14].mxu1 }
 0x26e   :  { %v618_v6 = vadd.f32 %v716_v3, %v617_v4  ;;  %v1002_v7 = vpop.f32.mrb[15].mxu1 }
 0x270   :  { %651 = vst [vmem:[#allocation14] sm:$0xff] %v618_v6  ;;  %v665_v8 = vsub.f32 %v618_v6, %v658_v5 }
 0x271   :  { %v622_v9 = vpop.f32.mrb[16].mxu1 }
 0x272   :  { %672 = vst [vmem:[#allocation15] sm:$0xff] %v665_v8  ;;  %v623_v10 = vadd.f32 %v716_v3, %v622_v9  ;;  %v1005_v11 = vpop.f32.mrb[17].mxu1 }
 0x274   :  { %652 = vst [vmem:[#allocation14 + $0x8] sm:$0xff] %v623_v10  ;;  %v666_v12 = vsub.f32 %v623_v10, %v659_v0 }
 0x275   :  { %v627_v1 = vpop.f32.mrb[18].mxu1 }
 0x276   :  { %673 = vst [vmem:[#allocation15 + $0x8] sm:$0xff] %v666_v12  ;;  %v628_v14 = vadd.f32 %v716_v3, %v627_v1  ;;  %v1008_v15 = vpop.f32.mrb[19].mxu1 }
 0x278   :  { %653 = vst [vmem:[#allocation14 + $0x10] sm:$0xff] %v628_v14  ;;  %v667_v16 = vsub.f32 %v628_v14, %v660_v13 }
 0x279   :  { %v632_v17 = vpop.f32.mrb[20].mxu1 }
 0x27a   :  { %674 = vst [vmem:[#allocation15 + $0x10] sm:$0xff] %v667_v16  ;;  %v633_v19 = vadd.f32 %v716_v3, %v632_v17  ;;  %v1011_v20 = vpop.f32.mrb[21].mxu1 }
 0x27c   :  { %654 = vst [vmem:[#allocation14 + $0x18] sm:$0xff] %v633_v19  ;;  %v668_v21 = vsub.f32 %v633_v19, %v661_v18 }
 0x27d   :  { %v637_v22 = vpop.f32.mrb[22].mxu1 }
 0x27e   :  { %675 = vst [vmem:[#allocation15 + $0x18] sm:$0xff] %v668_v21  ;;  %v638_v24 = vadd.f32 %v716_v3, %v637_v22  ;;  %v1014_v25 = vpop.f32.mrb[23].mxu1 }
 0x280   :  { %655 = vst [vmem:[#allocation14 + $0x20] sm:$0xff] %v638_v24  ;;  %v669_v26 = vsub.f32 %v638_v24, %v662_v23 }
 0x281   :  { %v642_v27 = vpop.f32.mrb[24].mxu1 }
 0x282   :  { %676 = vst [vmem:[#allocation15 + $0x20] sm:$0xff] %v669_v26  ;;  %v643_v29 = vadd.f32 %v716_v3, %v642_v27  ;;  %v1017_v30 = vpop.f32.mrb[25].mxu1 }
 0x284   :  { %656 = vst [vmem:[#allocation14 + $0x28] sm:$0xff] %v643_v29  ;;  %v670_v31 = vsub.f32 %v643_v29, %v663_v28 }
 0x285   :  { %v647_v32 = vpop.f32.mrb[26].mxu1 }
 0x286   :  { %677 = vst [vmem:[#allocation15 + $0x28] sm:$0xff] %v670_v31  ;;  %v648_v34 = vadd.f32 %v716_v3, %v647_v32  ;;  %v1020_v35 = vpop.f32.mrb[27].mxu1 }
 0x288   :  { %657 = vst [vmem:[#allocation14 + $0x30] sm:$0x3] %v648_v34  ;;  %v671_v36 = vsub.f32 %v648_v34, %v664_v33 }
 0x289   :  { %1296 = shalt.err (!%p1293_p4)
}
 0x28a   :  { %s1297_s5 = scalar_lea.hbm %s1696_s9, 896 }
 0x28b   :  { %p1298_p5 = scmp.ne.s32.totalorder %s1696_s9, %s1297_s5  ;;  %p1301_p6 = scmp.lt.u32.totalorder %s1297_s5, %s1696_s9 }
 0x28d   :  { %p1303_p7 = pnand %p1301_p6, %p1298_p5 }
 0x28f   :  { %1306 = shalt.err (!%p1303_p7)
}
 0x290   :  { %690 = dma.vmem_to_hbm [thread:$0]  %s685_s17, 896, %s1696_s9, [#allocation4], %s1343_s25, %s1343_s25, %s1344_s26   ;;  %678 = vst [vmem:[#allocation15 + $0x30] sm:$0x3] %v671_v36 }
 0x291   :  { %s1307_s30 = scalar_lea.vmem %s1650_s1, 896  ;;  %p1312_p9 = scmp.lt.s32.totalorder %s1650_s1, %s1650_s1 }
 0x292   :  { %p1308_p8 = scmp.ne.s32.totalorder %s1650_s1, %s1307_s30  ;;  %p1313_p10 = scmp.lt.s32.totalorder %s1307_s30, %s1307_s30 }
 0x294   :  { %p1314_p11 = por %p1313_p10, %p1312_p9 }
 0x296   :  { %p1315_p12 = pnand %p1314_p11, %p1308_p8 }
 0x298   :  { %1318 = shalt.err (!%p1315_p12)
}
 0x299   :  { %s1319_s16 = scalar_lea.hbm %s1697_s10, 896 }
 0x29a   :  { %p1320_p13 = scmp.ne.s32.totalorder %s1697_s10, %s1319_s16  ;;  %p1323_p0 = scmp.lt.u32.totalorder %s1319_s16, %s1697_s10 }
 0x29c   :  { %p1325_p1 = pnand %p1323_p0, %p1320_p13 }
 0x29e   :  { %1328 = shalt.err (!%p1325_p1)
}
 0x29f   :  { %702 = dma.vmem_to_hbm [thread:$0]  %s1650_s1, 896, %s1697_s10, [#allocation16], %s1343_s25, %s1343_s25, %s1344_s26  }
 0x2a0   :  { %1337 = dma.done.wait [#allocation4], 896  }
 0x2a1   :  { %1338 = vsyncadd [#allocation4], 4294966400 }
 0x2a2   :  { %1339 = dma.done.wait [#allocation16], 896  }
 0x2a3   :  { %1340 = vsyncadd [#allocation16], 4294966400 }
 0x2a4   :  { %709 = vsyncpa [#allocation3], 1 }
 0x2a5   :  { %710 = vsyncpa [#allocation6], 1 }
 0x2a6   :  { %711 = vsyncpa [#allocation9], 1 }
 0x2a7   :  { %712 = vsyncpa [#allocation12], 1 }
 0x2a8   :  { %713 = vsyncpa [#allocation4], 1 }
 0x2a9   :  { %714 = vsyncpa [#allocation16], 1 }

</bundles_post_ra>
